<compile_context>
chip_gen: v7x
topology: tpu7x:2x2x1
jax: 0.10.0
libtpu: 0.0.40
codegen_flags: <defaults>
</compile_context>

<pallas_src>
import functools
import math

import jax
import jax.numpy as jnp
from jax import lax
from jax.experimental import pallas as pl
from jax.experimental.pallas import tpu as pltpu


def _rup(a, m):
    return (a + m - 1) // m * m


def _cdiv(a, m):
    return (a + m - 1) // m


def _fused_kernel(xa_ref, xh_ref, wf_ref, bf_ref, o_ref, *, offsets, tj):
    # xa_ref: (1, 2*Cin_p, TJ)     current flat-input lane tile (both frames)
    # xh_ref: (1, 2*Cin_p, HALO)   lanes immediately after this tile (halo)
    # wf_ref: (2*Cout_p, Kexp)     fused spatial+temporal weight (resident)
    # bf_ref: (2*Cout_p, 1)        fused bias (resident)
    # o_ref : (1, 2*Cout_p, TJ)    both output frames, lane-dense
    pieces = []
    for off in offsets:                       # unrolled at trace time (kh*kw taps)
        if off == 0:
            pieces.append(xa_ref[0])
        elif off < tj:
            pieces.append(jnp.concatenate(
                [xa_ref[0, :, off:], xh_ref[0, :, :off]], axis=-1))
        else:                                  # degenerate tiny-image case (off == tj)
            pieces.append(xh_ref[0, :, :tj])
    patches = pieces[0] if len(pieces) == 1 else jnp.concatenate(pieces, axis=0)
    out = jnp.dot(wf_ref[...], patches, preferred_element_type=jnp.float32)
    out = out + bf_ref[...]
    o_ref[0] = out.astype(o_ref.dtype)


def decompose_conv_forward(x, w_spatial, b_spatial, w_time1, w_time2, w_time3,
                           *, padding=(1, 1), stride=(1, 1), dilation=(1, 1),
                           lane_tile_max=2048, use_bf16=False):
    """x: (B, Cin, T, H, W). w_spatial: (Cout, Cin, kh, kw). b_spatial: (Cout,).
    w_time_i: (Cout, Cout).  Returns (B, Cout, 2, Hout, Wout)."""
    B, Cin, T, H, W = x.shape
    Cout, Cin_w, kh, kw = w_spatial.shape
    assert Cin_w == Cin
    assert T >= 2, "forward uses the first two time frames"
    ph, pw = padding
    sh, sw = stride
    dh, dw = dilation

    Hp, Wp = H + 2 * ph, W + 2 * pw
    Hd = Hp - dh * (kh - 1)                 # dense (stride-1) conv output height
    Wd = Wp - dw * (kw - 1)
    assert Hd > 0 and Wd > 0
    Hout = (Hd - 1) // sh + 1
    Wout = (Wd - 1) // sw + 1

    # Zero-pad channel dims so the patch / output sublane dims are 8-aligned.
    Cin_p = _rup(Cin, 4)
    Cout_p = _rup(Cout, 4)

    # ---- fused weights: spatial conv + bias + both frames' temporal mixers --
    f32 = jnp.float32
    wsp = jnp.zeros((Cout_p, Cin_p, kh, kw), f32).at[:Cout, :Cin].set(w_spatial.astype(f32))
    bsp = jnp.zeros((Cout_p,), f32).at[:Cout].set(b_spatial.astype(f32))

    def _padm(m):
        return jnp.zeros((Cout_p, Cout_p), f32).at[:Cout, :Cout].set(m.astype(f32))

    m1, m2, m3 = _padm(w_time1), _padm(w_time2), _padm(w_time3)
    # out frame 0 = m2*T1 + m3*T2 ; out frame 1 = m1*T1 + m2*T2
    M = jnp.stack([jnp.stack([m2, m3]), jnp.stack([m1, m2])])      # (2,2,Cout_p,Cout_p)
    G = jnp.einsum('ftoa,acyx->fotcyx', M, wsp)                     # (2,Cout_p,2,Cin_p,kh,kw)
    Kexp = kh * kw * 2 * Cin_p
    # column order = ((dy*kw+dx)*2 + frame)*Cin_p + c  -- matches in-kernel patch build
    wf = G.transpose(0, 1, 4, 5, 2, 3).reshape(2 * Cout_p, Kexp)
    bf = jnp.einsum('ftoa,a->fo', M, bsp).reshape(2 * Cout_p, 1)

    # ---- flat zero-padded activations (1x HBM traffic, no im2col in HBM) ----
    x2 = x[:, :, :2].astype(f32)                                    # (B,Cin,2,H,W)
    x2 = jnp.pad(x2, ((0, 0), (0, Cin_p - Cin), (0, 0), (0, 0), (0, 0)))
    x2 = x2.transpose(0, 2, 1, 3, 4)                                # (B,2,Cin_p,H,W)
    x2 = jnp.pad(x2, ((0, 0), (0, 0), (0, 0), (ph, ph), (pw, pw)))  # (B,2,Cin_p,Hp,Wp)
    xflat = x2.reshape(B, 2 * Cin_p, Hp * Wp)

    # tap (dy,dx) of dense-output flat index q lives at flat input index q + off
    offsets = tuple(dy * dh * Wp + dx * dw for dy in range(kh) for dx in range(kw))
    off_max = max(offsets)
    halo = max(128, _rup(off_max, 128))

    L_out = Hd * Wp                                 # dense output length (junk cols at w>=Wd)
    tj_want = lane_tile_max if B > 1 else max(halo, _cdiv(L_out, 2))  # >=2 parallel points
    TJ = max(halo, _rup(min(tj_want, L_out), halo)) # multiple of halo (hence of 128)
    NJ = _cdiv(L_out, TJ)
    R = TJ // halo

    L_arr = NJ * TJ + halo
    xflat = jnp.pad(xflat, ((0, 0), (0, 0), (0, L_arr - Hp * Wp)))
    in_dtype = jnp.bfloat16 if use_bf16 else f32
    xflat = xflat.astype(in_dtype)
    wf = wf.astype(in_dtype)

    kernel = functools.partial(_fused_kernel, offsets=offsets, tj=TJ)

    isz = 2 if use_bf16 else 4
    vmem_est = (2 * (2 * Cin_p) * (TJ + halo) * isz          # double-buffered input tiles
                + 2 * (2 * Cout_p) * (Kexp * isz + 4)        # resident weights / bias
                + 2 * (2 * Cout_p) * TJ * 4                  # double-buffered output tile
                + Kexp * TJ * isz                            # in-kernel patch matrix
                + (2 * Cout_p) * TJ * 4                      # f32 matmul result
                + 2 * (2 * Cin_p) * TJ * isz)                # slice temporaries
    vmem_limit = int(min(48 * 2 ** 20, max(16 * 2 ** 20, 2 * vmem_est)))

    flops = 2 * (2 * Cout_p) * Kexp * B * NJ * TJ
    bytes_accessed = (B * (2 * Cin_p) * NJ * (TJ + halo) * isz
                      + (2 * Cout_p) * (Kexp * isz + 4)
                      + B * (2 * Cout_p) * NJ * TJ * 4)

    out = pl.pallas_call(
        kernel,
        out_shape=jax.ShapeDtypeStruct((B, 2 * Cout_p, NJ * TJ), x.dtype),
        grid_spec=pltpu.PrefetchScalarGridSpec(
            num_scalar_prefetch=0,
            grid=(B, NJ),
            in_specs=[
                pl.BlockSpec((1, 2 * Cin_p, TJ), lambda b, j: (b, 0, j)),            # flat frames
                pl.BlockSpec((1, 2 * Cin_p, halo), lambda b, j: (b, 0, (j + 1) * R)),  # lane halo
                pl.BlockSpec((2 * Cout_p, Kexp), lambda b, j: (0, 0)),                # fused weight
                pl.BlockSpec((2 * Cout_p, 1), lambda b, j: (0, 0)),                   # fused bias
            ],
            out_specs=pl.BlockSpec((1, 2 * Cout_p, TJ), lambda b, j: (b, 0, j)),
        ),
        compiler_params=pltpu.CompilerParams(
            dimension_semantics=("parallel", "parallel"),   # megacore sharding on v7x
            vmem_limit_bytes=vmem_limit,
        ),
        cost_estimate=pl.CostEstimate(
            flops=flops, transcendentals=0, bytes_accessed=bytes_accessed),
    )(xflat, xflat, wf, bf)

    # Drop lane/channel padding and junk columns, apply the conv stride, restore
    # the module's (B, Cout, 2, Hout, Wout) output layout.
    y = out[:, :, :L_out].reshape(B, 2, Cout_p, Hd, Wp)
    y = y[:, :, :Cout, ::sh, :Wd:sw]
    return y.transpose(0, 2, 1, 3, 4)


def _ref_decompose(x, w_spatial, b_spatial, m1, m2, m3, *, padding, stride, dilation):
    def conv2d(frame):
        return lax.conv_general_dilated(
            frame, w_spatial,
            window_strides=stride,
            padding=[(padding[0], padding[0]), (padding[1], padding[1])],
            rhs_dilation=dilation,
            dimension_numbers=('NCHW', 'OIHW', 'NCHW'),
            precision=lax.Precision.HIGHEST)

    b = b_spatial[None, :, None, None]
    s0 = conv2d(x[:, :, 0]) + b
    s1 = conv2d(x[:, :, 1]) + b
    mix = lambda m, s: jnp.einsum('oc,bchw->bohw', m, s, precision=lax.Precision.HIGHEST)
    out0 = mix(m2, s0) + mix(m3, s1)
    out1 = mix(m1, s0) + mix(m2, s1)
    return jnp.stack([out0, out1], axis=2)          # (B, Cout, 2, H, W)


if __name__ == "__main__":
    # Small shapes consistent with the module: video-like input (B, Cin, T, H, W),
    # 3x3 spatial conv, pad 1, stride 1.
    B, Cin, Cout, T, H, W = 2, 4, 8, 3, 16, 16
    kh = kw = 3
    padding, stride, dilation = (1, 1), (1, 1), (1, 1)

    key = jax.random.PRNGKey(0)
    kx, kws, kbs, k1, k2, k3 = jax.random.split(key, 6)

    x = jax.random.normal(kx, (B, Cin, T, H, W), dtype=jnp.float32)

    lim = 1.0 / math.sqrt(Cin * kh * kw)
    w_spatial = jax.random.uniform(kws, (Cout, Cin, kh, kw),
                                   minval=-lim, maxval=lim, dtype=jnp.float32)
    b_spatial = jax.random.uniform(kbs, (Cout,), minval=-lim, maxval=lim, dtype=jnp.float32)

    # The module initializes the temporal mixers to (zeros, identity, zeros); use
    # noisy weights so the correctness check exercises all terms.
    w_time1 = 0.1 * jax.random.normal(k1, (Cout, Cout), dtype=jnp.float32)
    w_time2 = jnp.eye(Cout, dtype=jnp.float32) + 0.1 * jax.random.normal(k2, (Cout, Cout), dtype=jnp.float32)
    w_time3 = 0.1 * jax.random.normal(k3, (Cout, Cout), dtype=jnp.float32)

    out = decompose_conv_forward(x, w_spatial, b_spatial, w_time1, w_time2, w_time3,
                                 padding=padding, stride=stride, dilation=dilation)
    out = jax.block_until_ready(out)

    ref = _ref_decompose(x, w_spatial, b_spatial, w_time1, w_time2, w_time3,
                         padding=padding, stride=stride, dilation=dilation)

    assert out.shape == (B, Cout, 2, H, W), f"bad shape {out.shape}"
    assert jnp.allclose(out, ref, atol=1e-4, rtol=1e-4), "mismatch vs reference"

    print("KERNEL_OK")
</pallas_src>

<mosaic_0001>
module attributes {stable_mosaic.version = 11 : i64} {
  func.func @_fused_kernel(%arg0: i32, %arg1: i32, %arg2: memref<1x8x384xf32, #tpu.memory_space<vmem>>, %arg3: memref<1x8x128xf32, #tpu.memory_space<vmem>>, %arg4: memref<16x72xf32, #tpu.memory_space<vmem>>, %arg5: memref<16x1xf32, #tpu.memory_space<vmem>>, %arg6: memref<1x16x384xf32, #tpu.memory_space<vmem>>) attributes {dimension_semantics = [#tpu.dimension_semantics<parallel>, #tpu.dimension_semantics<parallel>], iteration_bounds = array<i64: 2, 1>, scalar_prefetch = 0 : i64, scratch_operands = 0 : i64, tpu.core_type = #tpu.core_type<tc>, window_params = [{transform_indices = @transform_0, window_bounds = array<i64: 1, 8, 384>}, {transform_indices = @transform_1, window_bounds = array<i64: 1, 8, 128>}, {pipeline_mode = #tpu.pipeline_mode<synchronous>, transform_indices = @transform_2, window_bounds = array<i64: 16, 72>}, {pipeline_mode = #tpu.pipeline_mode<synchronous>, transform_indices = @transform_3, window_bounds = array<i64: 16, 1>}, {transform_indices = @transform_4, window_bounds = array<i64: 1, 16, 384>}]} {
    %c0 = arith.constant 0 : index
    %c0_0 = arith.constant 0 : index
    %c0_1 = arith.constant 0 : index
    %0 = vector.load %arg2[%c0, %c0_0, %c0_1] : memref<1x8x384xf32, #tpu.memory_space<vmem>>, vector<1x8x384xf32>
    %1 = vector.shape_cast %0 : vector<1x8x384xf32> to vector<8x384xf32>
    %c0_2 = arith.constant 0 : index
    %c0_3 = arith.constant 0 : index
    %c1 = arith.constant 1 : index
    %2 = vector.load %arg2[%c0_2, %c0_3, %c1] : memref<1x8x384xf32, #tpu.memory_space<vmem>>, vector<1x8x383xf32>
    %3 = vector.shape_cast %2 : vector<1x8x383xf32> to vector<8x383xf32>
    %c0_4 = arith.constant 0 : index
    %c0_5 = arith.constant 0 : index
    %c0_6 = arith.constant 0 : index
    %4 = vector.load %arg3[%c0_4, %c0_5, %c0_6] : memref<1x8x128xf32, #tpu.memory_space<vmem>>, vector<1x8x1xf32>
    %5 = vector.shape_cast %4 : vector<1x8x1xf32> to vector<8x1xf32>
    %6 = tpu.concatenate %3, %5 in 1 : vector<8x383xf32>, vector<8x1xf32> -> vector<8x384xf32>
    %c0_7 = arith.constant 0 : index
    %c0_8 = arith.constant 0 : index
    %c2 = arith.constant 2 : index
    %7 = vector.load %arg2[%c0_7, %c0_8, %c2] : memref<1x8x384xf32, #tpu.memory_space<vmem>>, vector<1x8x382xf32>
    %8 = vector.shape_cast %7 : vector<1x8x382xf32> to vector<8x382xf32>
    %c0_9 = arith.constant 0 : index
    %c0_10 = arith.constant 0 : index
    %c0_11 = arith.constant 0 : index
    %9 = vector.load %arg3[%c0_9, %c0_10, %c0_11] : memref<1x8x128xf32, #tpu.memory_space<vmem>>, vector<1x8x2xf32>
    %10 = vector.shape_cast %9 : vector<1x8x2xf32> to vector<8x2xf32>
    %11 = tpu.concatenate %8, %10 in 1 : vector<8x382xf32>, vector<8x2xf32> -> vector<8x384xf32>
    %c0_12 = arith.constant 0 : index
    %c0_13 = arith.constant 0 : index
    %c18 = arith.constant 18 : index
    %12 = vector.load %arg2[%c0_12, %c0_13, %c18] : memref<1x8x384xf32, #tpu.memory_space<vmem>>, vector<1x8x366xf32>
    %13 = vector.shape_cast %12 : vector<1x8x366xf32> to vector<8x366xf32>
    %c0_14 = arith.constant 0 : index
    %c0_15 = arith.constant 0 : index
    %c0_16 = arith.constant 0 : index
    %14 = vector.load %arg3[%c0_14, %c0_15, %c0_16] : memref<1x8x128xf32, #tpu.memory_space<vmem>>, vector<1x8x18xf32>
    %15 = vector.shape_cast %14 : vector<1x8x18xf32> to vector<8x18xf32>
    %16 = tpu.concatenate %13, %15 in 1 : vector<8x366xf32>, vector<8x18xf32> -> vector<8x384xf32>
    %c0_17 = arith.constant 0 : index
    %c0_18 = arith.constant 0 : index
    %c19 = arith.constant 19 : index
    %17 = vector.load %arg2[%c0_17, %c0_18, %c19] : memref<1x8x384xf32, #tpu.memory_space<vmem>>, vector<1x8x365xf32>
    %18 = vector.shape_cast %17 : vector<1x8x365xf32> to vector<8x365xf32>
    %c0_19 = arith.constant 0 : index
    %c0_20 = arith.constant 0 : index
    %c0_21 = arith.constant 0 : index
    %19 = vector.load %arg3[%c0_19, %c0_20, %c0_21] : memref<1x8x128xf32, #tpu.memory_space<vmem>>, vector<1x8x19xf32>
    %20 = vector.shape_cast %19 : vector<1x8x19xf32> to vector<8x19xf32>
    %21 = tpu.concatenate %18, %20 in 1 : vector<8x365xf32>, vector<8x19xf32> -> vector<8x384xf32>
    %c0_22 = arith.constant 0 : index
    %c0_23 = arith.constant 0 : index
    %c20 = arith.constant 20 : index
    %22 = vector.load %arg2[%c0_22, %c0_23, %c20] : memref<1x8x384xf32, #tpu.memory_space<vmem>>, vector<1x8x364xf32>
    %23 = vector.shape_cast %22 : vector<1x8x364xf32> to vector<8x364xf32>
    %c0_24 = arith.constant 0 : index
    %c0_25 = arith.constant 0 : index
    %c0_26 = arith.constant 0 : index
    %24 = vector.load %arg3[%c0_24, %c0_25, %c0_26] : memref<1x8x128xf32, #tpu.memory_space<vmem>>, vector<1x8x20xf32>
    %25 = vector.shape_cast %24 : vector<1x8x20xf32> to vector<8x20xf32>
    %26 = tpu.concatenate %23, %25 in 1 : vector<8x364xf32>, vector<8x20xf32> -> vector<8x384xf32>
    %c0_27 = arith.constant 0 : index
    %c0_28 = arith.constant 0 : index
    %c36 = arith.constant 36 : index
    %27 = vector.load %arg2[%c0_27, %c0_28, %c36] : memref<1x8x384xf32, #tpu.memory_space<vmem>>, vector<1x8x348xf32>
    %28 = vector.shape_cast %27 : vector<1x8x348xf32> to vector<8x348xf32>
    %c0_29 = arith.constant 0 : index
    %c0_30 = arith.constant 0 : index
    %c0_31 = arith.constant 0 : index
    %29 = vector.load %arg3[%c0_29, %c0_30, %c0_31] : memref<1x8x128xf32, #tpu.memory_space<vmem>>, vector<1x8x36xf32>
    %30 = vector.shape_cast %29 : vector<1x8x36xf32> to vector<8x36xf32>
    %31 = tpu.concatenate %28, %30 in 1 : vector<8x348xf32>, vector<8x36xf32> -> vector<8x384xf32>
    %c0_32 = arith.constant 0 : index
    %c0_33 = arith.constant 0 : index
    %c37 = arith.constant 37 : index
    %32 = vector.load %arg2[%c0_32, %c0_33, %c37] : memref<1x8x384xf32, #tpu.memory_space<vmem>>, vector<1x8x347xf32>
    %33 = vector.shape_cast %32 : vector<1x8x347xf32> to vector<8x347xf32>
    %c0_34 = arith.constant 0 : index
    %c0_35 = arith.constant 0 : index
    %c0_36 = arith.constant 0 : index
    %34 = vector.load %arg3[%c0_34, %c0_35, %c0_36] : memref<1x8x128xf32, #tpu.memory_space<vmem>>, vector<1x8x37xf32>
    %35 = vector.shape_cast %34 : vector<1x8x37xf32> to vector<8x37xf32>
    %36 = tpu.concatenate %33, %35 in 1 : vector<8x347xf32>, vector<8x37xf32> -> vector<8x384xf32>
    %c0_37 = arith.constant 0 : index
    %c0_38 = arith.constant 0 : index
    %c38 = arith.constant 38 : index
    %37 = vector.load %arg2[%c0_37, %c0_38, %c38] : memref<1x8x384xf32, #tpu.memory_space<vmem>>, vector<1x8x346xf32>
    %38 = vector.shape_cast %37 : vector<1x8x346xf32> to vector<8x346xf32>
    %c0_39 = arith.constant 0 : index
    %c0_40 = arith.constant 0 : index
    %c0_41 = arith.constant 0 : index
    %39 = vector.load %arg3[%c0_39, %c0_40, %c0_41] : memref<1x8x128xf32, #tpu.memory_space<vmem>>, vector<1x8x38xf32>
    %40 = vector.shape_cast %39 : vector<1x8x38xf32> to vector<8x38xf32>
    %41 = tpu.concatenate %38, %40 in 1 : vector<8x346xf32>, vector<8x38xf32> -> vector<8x384xf32>
    %42 = tpu.concatenate %1, %6, %11, %16, %21, %26, %31, %36, %41 in 0 : vector<8x384xf32>, vector<8x384xf32>, vector<8x384xf32>, vector<8x384xf32>, vector<8x384xf32>, vector<8x384xf32>, vector<8x384xf32>, vector<8x384xf32>, vector<8x384xf32> -> vector<72x384xf32>
    %c0_42 = arith.constant 0 : index
    %c0_43 = arith.constant 0 : index
    %43 = vector.load %arg4[%c0_42, %c0_43] : memref<16x72xf32, #tpu.memory_space<vmem>>, vector<16x72xf32>
    %cst = arith.constant dense<0.000000e+00> : vector<16x384xf32>
    %44 = tpu.matmul %43, %42, %cst {dimension_numbers = #tpu.dot_dimension_numbers<[1], [0], [0], [1], [0, 0, 1, 1], [], []>} : vector<16x72xf32>, vector<72x384xf32>, vector<16x384xf32> -> vector<16x384xf32>
    %c0_44 = arith.constant 0 : index
    %c0_45 = arith.constant 0 : index
    %45 = vector.load %arg5[%c0_44, %c0_45] : memref<16x1xf32, #tpu.memory_space<vmem>>, vector<16x1xf32>
    %46 = vector.broadcast %45 : vector<16x1xf32> to vector<16x384xf32>
    %47 = arith.addf %44, %46 : vector<16x384xf32>
    %c0_46 = arith.constant 0 : index
    %c0_47 = arith.constant 0 : index
    %c0_48 = arith.constant 0 : index
    %48 = vector.load %arg6[%c0_46, %c0_47, %c0_48] : memref<1x16x384xf32, #tpu.memory_space<vmem>>, vector<1x16x384xf32>
    %49 = vector.shape_cast %48 : vector<1x16x384xf32> to vector<16x384xf32>
    %50 = vector.shape_cast %47 : vector<16x384xf32> to vector<1x16x384xf32>
    tpu.vector_store %arg6[%c0_46, %c0_47, %c0_48], %50 {strides = array<i32>} : memref<1x16x384xf32, #tpu.memory_space<vmem>>, vector<1x16x384xf32>,
    return
  }
  func.func @transform_0(%arg0: i32, %arg1: i32) -> (i32, i32, i32) {
    %c0_i32 = arith.constant 0 : i32
    %c0_i32_0 = arith.constant 0 : i32
    return %arg0, %c0_i32, %arg1 : i32, i32, i32
  }
  func.func @transform_1(%arg0: i32, %arg1: i32) -> (i32, i32, i32) {
    %c1_i32 = arith.constant 1 : i32
    %0 = arith.addi %arg1, %c1_i32 : i32
    %c3_i32 = arith.constant 3 : i32
    %1 = arith.muli %0, %c3_i32 : i32
    %c0_i32 = arith.constant 0 : i32
    %c0_i32_0 = arith.constant 0 : i32
    return %arg0, %c0_i32, %1 : i32, i32, i32
  }
  func.func @transform_2(%arg0: i32, %arg1: i32) -> (i32, i32) {
    %c0_i32 = arith.constant 0 : i32
    %c0_i32_0 = arith.constant 0 : i32
    %c0_i32_1 = arith.constant 0 : i32
    return %c0_i32, %c0_i32_0 : i32, i32
  }
  func.func @transform_3(%arg0: i32, %arg1: i32) -> (i32, i32) {
    %c0_i32 = arith.constant 0 : i32
    %c0_i32_0 = arith.constant 0 : i32
    %c0_i32_1 = arith.constant 0 : i32
    return %c0_i32, %c0_i32_0 : i32, i32
  }
  func.func @transform_4(%arg0: i32, %arg1: i32) -> (i32, i32, i32) {
    %c0_i32 = arith.constant 0 : i32
    %c0_i32_0 = arith.constant 0 : i32
    return %arg0, %c0_i32, %arg1 : i32, i32, i32
  }
}

</mosaic_0001>

<bundles_post_ra>
// kernel: tpu_custom_call.1
= control target key start
LH: loop header
LB: loop body
LE: loop exit
PB: predicated region body
PF: predicated region fallthrough
CT: control target
= control target key end

     0   :  { %9 = vsyncpa [#allocation3], 0  ;;  %s1440_s0 = inlined_call_operand.hbm [shape: f32[2,8,512], index: 0, kind: input, shape index: {}]   ;;  %s1441_s1 = inlined_call_operand.hbm [shape: f32[2,8,512], index: 1, kind: input, shape index: {}]   ;;  %s1442_s2 = inlined_call_operand.vmem [shape: f32[16,72], index: 2, kind: input, shape index: {}]   ;;  %s1443_s3 = inlined_call_operand.vmem [shape: f32[16,1], index: 3, kind: input, shape index: {}]   ;;  %s1444_s4 = inlined_call_operand.hbm [shape: f32[2,16,384], index: 4, kind: output, shape index: {}]  }
   0x1   :  { %11 = vsyncpa [#allocation3 + $0x1], 0 }
   0x2   :  { %12 = vsyncpa [#allocation6], 0 }
   0x3   :  { %14 = vsyncpa [#allocation6 + $0x1], 0 }
   0x4   :  { %15 = vsyncpa [#allocation4], 0 }
   0x5   :  { %17 = vsyncpa [#allocation4 + $0x1], 0  ;;  %s1166_s15 = smov 0   ;;  %s1168_s16 = smov 0  }
   0x6   :  { %s1170_s17 = smov 0   ;;  %s1172_s18 = smov 0  }
   0x7   :  { %s1174_s19 = smov 0   ;;  %s1176_s20 = smov 0  }
   0x8 LB: > { %s738_s21 = sadd.s32 4294967295, %s1124_s20   ;;  %s739_s22 = sadd.s32 4294967294, %s1124_s20   ;;  %s1124_s20 = sphi %s1176_s20, %s23_s20   ;;  %s1120_s19 = sphi %s1174_s19, %s1463_s19   ;;  %s1116_s18 = sphi %s1172_s18, %s1462_s18   ;;  %s1112_s17 = sphi %s1170_s17, %s1461_s17   ;;  %s1108_s16 = sphi %s1168_s16, %s1460_s16   ;;  %s1104_s15 = sphi %s1166_s15, %s1459_s15  }
   0x9   : > { %s35_s23 = sadd.s32 1, %s1120_s19  ;;  %s44_s24 = sadd.s32 1, %s1112_s17 }
   0xa   : > { %p37_p0 = scmp.ge.s32.totalorder %s35_s23, 2  ;;  %p51_p1 = scmp.ne.s32.totalorder %s1112_s17, %s1108_s16 }
   0xb   : > { %p52_p2 = scmp.eq.s32.totalorder %s1124_s20, 0  ;;  %p57_p3 = scmp.ne.s32.totalorder %s1108_s16, %s1104_s15 }
   0xc   : > { %s1465_s23 = smov (%p37_p0, %s35_s23), 0  ;;  %p58_p5 = scmp.eq.s32.totalorder %s738_s21, 0 }
   0xd   : > { %p1207_p4 = por %p52_p2, %p51_p1  ;;  %s39_s26 = ssub.s32 %s1120_s19, %s1465_s23 }
   0xe   : > { %p157_p6 = scmp.eq.s32.totalorder %s738_s21, 1  ;;  %p42_p7 = scmp.eq.s32.totalorder %s39_s26, 0 }
   0xf   : > { %p1213_p8 = por %p58_p5, %p57_p3  ;;  %p163_p10 = scmp.eq.s32.totalorder %s739_s22, 1 }
  0x10   : > { %p1217_p9 = por %p157_p6, %p51_p1  ;;  %p843_p13 = scmp.lt.s32.totalorder %s1124_s20, 2 }
  0x11   : > { %s1448_s27 = scalar_select %p1213_p8, 1, 0 }
  0x12   : > { %s1449_s28 = scalar_select %p1217_p9, 1, 0 }
  0x13   : > { %s1222_s29 = scalar_select %p42_p7, %s1112_s17, %s44_s24  }
  0x14   : > { %p1224_p11 = por %p163_p10, %p57_p3  ;;  %s1231_s5 = sand.u32 1, %s1112_s17  }
  0x15   : > { %s822_s6 = smul.u32 24, %s1231_s5  ;;  %s756_s7 = sshll.u32 %s1120_s19, 9 }
  0x16   : > { %s1450_s30 = scalar_select %p1224_p11, 1, 0 }
  0x17   : > { %p1237_p0 = pnand %p843_p13, %p1207_p4  ;;  %s1246_s11 = scalar_lea.hbm %s1440_s0, %s756_s7 }
  0x18   : > { %s193_s12 = scalar_lea.vmem [#allocation2], %s822_s6  ;;  %s190_s14 = scalar_lea.sflag [#allocation3], %s1231_s5 }
  0x19   : > { %s209_s13 = sshll.u32 %s193_s12, 4  ;;  %s977_s21 = scalar_lea.hbm %s1246_s11, 384  ;;  %s1248_s13 = int_to_ptr.vmem [resolvable:$true] %s209_s13 }
  0x1a   : > { %p978_p2 = scmp.ne.s32.totalorder %s1246_s11, %s977_s21  ;;  %p979_p3 = pneg %p1237_p0 }
  0x1b   : > { %s982_s25 = scalar_lea.hbm %s1440_s0, 1024  ;;  %p983_p6 = scmp.lt.u32.totalorder %s1246_s11, %s1440_s0 }
  0x1c   : > { %p980_p4 = pnand %p979_p3, %p978_p2  ;;  %p984_p7 = scmp.lt.u32.totalorder %s982_s25, %s977_s21 }
  0x1d   : > { %p986_p13 = scmp.lt.u32.totalorder %s977_s21, %s1246_s11 }
  0x1e   : > { %p981_p5 = pneg %p980_p4  ;;  %p985_p10 = por %p984_p7, %p983_p6 }
  0x20   : > { %p987_p12 = por %p986_p13, %p985_p10 }
  0x22   : > { %p988_p1 = pnand %p987_p12, %p981_p5 }
  0x24   : > { %991 = shalt.err (!%p988_p1)
}
  0x25   : > { %s992_s6 = scalar_lea.vmem %s1248_s13, 384  ;;  %s1126_s10 = smov [#allocation2]  }
  0x26   : > { %p993_p2 = scmp.ne.s32.totalorder %s1248_s13, %s992_s6  ;;  %s997_s12 = sshll.u32 %s1126_s10, 4  ;;  %s998_s12 = int_to_ptr.vmem [resolvable:$false] %s997_s12 }
  0x27   : > { %s999_s22 = scalar_lea.vmem %s998_s12, 768  ;;  %p1000_p9 = scmp.lt.s32.totalorder %s1248_s13, %s998_s12 }
  0x28   : > { %p995_p4 = pnand %p993_p2, %p979_p3  ;;  %p1001_p6 = scmp.lt.s32.totalorder %s999_s22, %s992_s6 }
  0x2a   : > { %p996_p11 = pneg %p995_p4  ;;  %p1002_p7 = por %p1001_p6, %p1000_p9 }
  0x2c   : > { %p1003_p10 = pnand %p1002_p7, %p996_p11 }
  0x2e   : > { %1006 = shalt.err (!%p1003_p10)
}
  0x2f   : > { %835 = dma.hbm_to_vmem [thread:$0]  (!%p1237_p0), %s1246_s11, 384, %s1248_s13, %s190_s14  }
  0x30   : > { %p236_p12 = scmp.lt.s32.totalorder %s1124_s20, 3  ;;  %s744_s21 = sshll.u32 %s1231_s5, 3 }
  0x31   : > { %s669_s26 = scalar_lea.hbm %s1441_s1, %s756_s7  ;;  %p1452_p9 = scmp.ge.s32.totalorder %s1124_s20, 1 }
  0x32   : > { %s1290_s6 = scalar_lea.hbm %s669_s26, 384  ;;  %s220_s10 = scalar_lea.vmem [#allocation5], %s744_s21 }
  0x33   : > { %p1286_p11 = pnand %p1452_p9, %p236_p12  ;;  %s231_s12 = sshll.u32 %s220_s10, 4  ;;  %s232_s12 = int_to_ptr.vmem [resolvable:$true] %s231_s12 }
  0x34   : > { %s217_s11 = scalar_lea.sflag [#allocation6], %s1231_s5  ;;  %s1037_s13 = scalar_lea.hbm %s669_s26, 512 }
  0x35   : > { %s1453_s9 = scalar_select %p1286_p11, 1, 0 }
  0x36   : > { %p1008_p1 = scmp.ne.s32.totalorder %s1290_s6, %s1037_s13  ;;  %s1012_s22 = scalar_lea.hbm %s1441_s1, 1024 }
  0x37   : > { %p1013_p2 = scmp.lt.u32.totalorder %s1290_s6, %s1441_s1  ;;  %p1014_p4 = scmp.lt.u32.totalorder %s1012_s22, %s1037_s13 }
  0x38   : > { %p1010_p5 = pnand %p1008_p1, %p979_p3  ;;  %p1016_p7 = scmp.lt.u32.totalorder %s1037_s13, %s1290_s6 }
  0x39   : > { %p1015_p6 = por %p1014_p4, %p1013_p2 }
  0x3a   : > { %p1011_p13 = pneg %p1010_p5 }
  0x3b   : > { %p1017_p10 = por %p1016_p7, %p1015_p6 }
  0x3d   : > { %p1018_p12 = pnand %p1017_p10, %p1011_p13 }
  0x3f   : > { %1021 = shalt.err (!%p1018_p12)
}
  0x40   : > { %s1022_s5 = scalar_lea.vmem %s232_s12, 128  ;;  %s1127_s21 = smov [#allocation5]  }
  0x41   : > { %p1023_p9 = scmp.ne.s32.totalorder %s232_s12, %s1022_s5  ;;  %s1027_s26 = sshll.u32 %s1127_s21, 4  ;;  %s1028_s26 = int_to_ptr.vmem [resolvable:$false] %s1027_s26 }
  0x42   : > { %s1029_s10 = scalar_lea.vmem %s1028_s26, 256  ;;  %p1030_p8 = scmp.lt.s32.totalorder %s232_s12, %s1028_s26 }
  0x43   : > { %p1025_p1 = pnand %p1023_p9, %p979_p3  ;;  %p1031_p11 = scmp.lt.s32.totalorder %s1029_s10, %s1022_s5 }
  0x45   : > { %p1026_p5 = pneg %p1025_p1  ;;  %p1032_p2 = por %p1031_p11, %p1030_p8 }
  0x47   : > { %p1033_p4 = pnand %p1032_p2, %p1026_p5 }
  0x49   : > { %1036 = shalt.err (!%p1033_p4)
}
  0x4a   : > { %838 = dma.hbm_to_vmem [thread:$0]  (!%p1237_p0), %s1290_s6, 128, %s232_s12, %s217_s11  }
  0x4b   : > { %p1454_p13 = scmp.ne.s32.totalorder %s1453_s9, 0 }
  0x4c   : > { %s1314_s13 = sand.u32 (!%p1454_p13), 1, %s1108_s16   ;;  %p1455_p3 = scmp.ne.s32.totalorder (!%p1454_p13), %s1448_s27, 0 }
  0x4d   : > { %240 = sbr.rel (%p1454_p13) target bundleno = 474 (0x1da), region = 36  ;;  %s243_s14 = scalar_lea.sflag (!%p1454_p13), [#allocation3], %s1314_s13 }
  0x4e   : > { %s823_s7 = smul.u32 (!%p1454_p13), 24, %s1314_s13 }
  0x50   : > { %s246_s22 = scalar_lea.vmem (!%p1454_p13), [#allocation2], %s823_s7 }
  0x54   : > { %1091 = dma.done.wait (%p1455_p3), %s243_s14, 384  }
  0x55   : > { %1093 = vsyncadd (%p1455_p3), %s243_s14, 4294966912  ;;  %s748_s8 = sshll.u32 %s1314_s13, 3  ;;  %s252_s9 = scalar_lea.sflag [#allocation6], %s1314_s13 }
  0x56   : > { %s255_s6 = scalar_lea.vmem [#allocation5], %s748_s8 }
  0x57   : > { %1095 = dma.done.wait (%p1455_p3), %s252_s9, 128  }
  0x58   : > { %1097 = vsyncadd (%p1455_p3), %s252_s9, 4294967168  ;;  %v294_v0 = vld [vmem:[%s246_s22 + $0x8] sm:$0xff]  ;;  %v1328_v1 = vld [vmem:[%s246_s22 + $0x10] sm:$0xff]  ;;  %s1128_s12 = smov 126   ;;  %s1129_s11 = smov 127   ;;  %vm443_vm0 = vcmask 588800  }
  0x59   : > { %v1330_v2 = vld [vmem:[%s246_s22] sm:$0xff]  ;;  %v915_v3 = vpack.i.bf16 %v1328_v1, %v294_v0  ;;  %s1130_s24 = smov 110   ;;  %s1131_s27 = smov 108   ;;  %v1135_v7 = vmov 0.0   ;;  %v1136_v8 = vmov 0   ;;  %v432_v10 = vld [vmem:[%s1443_s3 + $0x8] sm:$0xff] }
  0x5a   : > { %v296_v4 = vld [vmem:[%s255_s6] sm:$0xff]  ;;  %s1132_s25 = smov 109   ;;  %s1133_s5 = smov 91   ;;  %v1337_v6 = vld [vmem:[%s1442_s2] sm:$0xff]  ;;  %514 = vmatprep.mubr.f32.mxu0 %v1135_v7  ;;  %975 = vset.pattern.permute.xlu0 %v1136_v8  ;;  %vm306_vm1 = vcmask 1039360   ;;  %vm323_vm2 = vcmask 1031168  }
  0x5b   : > { %916 = vrot.lane.b32.xlu1 %v915_v3, %s1128_s12  ;;  %906 = vrot.lane.b32.xlu0 %v915_v3, %s1129_s11  ;;  %v910_v5 = vpack.i.bf16 %v296_v4, %v1330_v2  ;;  %s1134_s21 = smov 92   ;;  %s1137_s7 = smov 90   ;;  %v431_v9 = vld [vmem:[%s1443_s3] sm:$0xff]  ;;  %vm339_vm3 = vcmask 900096   ;;  %vm355_vm4 = vcmask 891904   ;;  %vm371_vm5 = vcmask 883712  }
  0x5c   : > { %787 = vmatprep.mubr.msk.f32.mxu1 %vm443_vm0, %v1337_v6  ;;  %976 = vset.pattern.permute.xlu1 %v1136_v8  ;;  %vm387_vm6 = vcmask 752640   ;;  %vm403_vm7 = vcmask 744448   ;;  %vm419_vm8 = vcmask 736256   ;;  %p1456_p0 = scmp.ne.s32.totalorder %s1449_s28, 0 }
  0x5f   : > { %921 = vrot.lane.b32.xlu1 %v915_v3, %s1130_s24  ;;  %911 = vrot.lane.b32.xlu0 %v910_v5, %s1129_s11  ;;  %s824_s11 = smul.u32 48, %s1314_s13 }
  0x63   : > { %931 = vrot.lane.b32.xlu1 %v910_v5, %s1130_s24  ;;  %926 = vrot.lane.b32.xlu0 %v910_v5, %s1128_s12  ;;  %s284_s24 = scalar_lea.vmem [#allocation7], %s824_s11 }
  0x67   : > { %941 = vrot.lane.b32.xlu1 %v915_v3, %s1131_s27  ;;  %936 = vrot.lane.b32.xlu0 %v915_v3, %s1132_s25 }
  0x6b   : > { %951 = vrot.lane.b32.xlu1 %v910_v5, %s1131_s27  ;;  %946 = vrot.lane.b32.xlu0 %v910_v5, %s1132_s25  ;;  %s624_s27 = sshll.u32 %s284_s24, 4  ;;  %s825_s25 = smul.u32 768, %s1116_s18  ;;  %s1386_s27 = int_to_ptr.vmem [resolvable:$true] %s624_s27 }
  0x6c   : > { %s609_s18 = scalar_lea.sflag [#allocation4], %s1314_s13  ;;  %s1038_s10 = scalar_lea.vmem %s1386_s27, 768 }
  0x6d   : > { %s1391_s26 = scalar_lea.hbm %s1444_s4, %s825_s25  ;;  %p1039_p8 = scmp.ne.s32.totalorder %s1386_s27, %s1038_s10 }
  0x6f   : > { %961 = vrot.lane.b32.xlu1 %v915_v3, %s1133_s5  ;;  %956 = vrot.lane.b32.xlu0 %v915_v3, %s1134_s21  ;;  %p1040_p11 = pnand %p1039_p8, %p1456_p0 }
  0x71   : > { %p1041_p6 = pneg %p1040_p11 }
  0x73   : > { %971 = vrot.lane.b32.xlu1 %v910_v5, %s1133_s5  ;;  %966 = vrot.lane.b32.xlu0 %v910_v5, %s1134_s21 }
  0x77   : > { %417 = vrot.lane.b32.xlu1 %v1328_v1, %s1137_s7  ;;  %415 = vrot.lane.b32.xlu0 %v294_v0, %s1137_s7 }
  0x7b   : > { %425 = vrot.lane.b32.xlu1 %v296_v4, %s1137_s7  ;;  %413 = vrot.lane.b32.xlu0 %v1330_v2, %s1137_s7  ;;  %s1138_s7 = smov [#allocation7]  }
  0x7c   : > { %s1042_s14 = sshll.u32 %s1138_s7, 4  ;;  %s1043_s14 = int_to_ptr.vmem [resolvable:$false] %s1042_s14 }
  0x7d   : > { %s1044_s22 = scalar_lea.vmem %s1043_s14, 1536  ;;  %p1045_p7 = scmp.lt.s32.totalorder %s1386_s27, %s1043_s14 }
  0x7e   : > { %p1046_p10 = scmp.lt.s32.totalorder %s1044_s22, %s1038_s10 }
  0x7f   : > { %435 = vperm.xlu0 %975, %v431_v9   ;;  %440 = vperm.xlu1 %976, %v432_v10  }
  0x80   : > { %p1047_p12 = por %p1046_p10, %p1045_p7 }
  0x82   : > { %p1048_p9 = pnand %p1047_p12, %p1041_p6 }
  0xcd   : > { %v917_v11 = vpop.permute.xlu1 %916  ;;  %v907_v12 = vpop.permute.xlu0 %906 }
  0xce   : > { %v909_v13 = vunpack.i.h.bf16 %v907_v12  ;;  %v908_v14 = vunpack.i.l.bf16 %v907_v12  ;;  %v919_v15 = vunpack.i.h.bf16 %v917_v11  ;;  %v918_v16 = vunpack.i.l.bf16 %v917_v11 }
  0xd0   : > { %v308_v17 = vsel %vm306_vm1, %v908_v14, %v909_v13  ;;  %v325_v27 = vsel %vm323_vm2, %v918_v16, %v919_v15 }
  0xd1   : > { %v922_v18 = vpop.permute.xlu1 %921  ;;  %v912_v19 = vpop.permute.xlu0 %911  ;;  %v790_v20 = vpack.c.bf16 %v308_v17, %v294_v0 }
  0xd2   : > { %v924_v21 = vunpack.i.h.bf16 %v922_v18  ;;  %v923_v22 = vunpack.i.l.bf16 %v922_v18  ;;  %v914_v23 = vunpack.i.h.bf16 %v912_v19  ;;  %v913_v24 = vunpack.i.l.bf16 %v912_v19 }
  0xd3   : > { %791 = vmatprep.subr.bf16.mxu0 %v790_v20 }
  0xd4   : > { %v307_v25 = vsel %vm306_vm1, %v913_v24, %v908_v14  ;;  %v316_v26 = vsel %vm306_vm1, %v909_v13, %v914_v23  ;;  %v341_v28 = vsel %vm339_vm3, %v923_v22, %v924_v21 }
  0xd5   : > { %v932_v29 = vpop.permute.xlu1 %931  ;;  %v927_v30 = vpop.permute.xlu0 %926  ;;  %v792_v31 = vpack.c.bf16 %v307_v25, %v1330_v2  ;;  %v806_v32 = vpack.c.bf16 %v316_v26, %v1328_v1  ;;  %v794_v33 = vpack.c.bf16 %v341_v28, %v325_v27 }
  0xd6   : > { %v934_v34 = vunpack.i.h.bf16 %v932_v29  ;;  %v933_v35 = vunpack.i.l.bf16 %v932_v29  ;;  %v929_v36 = vunpack.i.h.bf16 %v927_v30  ;;  %v928_v37 = vunpack.i.l.bf16 %v927_v30 }
  0xd7   : > { %793 = vmatpush1.bf16.msra.mxu0 %v792_v31  ;;  %807 = vmatprep.subr.bf16.mxu1 %v806_v32  ;;  %v430_v31 = vld [vmem:[%s1442_s2 + $0x8] sm:$0xff] }
  0xd8   : > { %795 = vmatprep.subr.bf16.mxu0 %v794_v33  ;;  %809 = vmatpush3.bf16.msra.mxu1 %v806_v32  ;;  %v324_v38 = vsel %vm323_vm2, %v928_v37, %v918_v16  ;;  %v340_v39 = vsel %vm339_vm3, %v933_v35, %v923_v22  ;;  %v332_v40 = vsel %vm323_vm2, %v919_v15, %v929_v36 }
  0xd9   : > { %v942_v41 = vpop.permute.xlu1 %941  ;;  %v937_v42 = vpop.permute.xlu0 %936  ;;  %v796_v43 = vpack.c.bf16 %v340_v39, %v324_v38  ;;  %v348_v44 = vsel %vm339_vm3, %v924_v21, %v934_v34 }
  0xda   : > { %v944_v45 = vunpack.i.h.bf16 %v942_v41  ;;  %v943_v46 = vunpack.i.l.bf16 %v942_v41  ;;  %v939_v47 = vunpack.i.h.bf16 %v937_v42  ;;  %v938_v48 = vunpack.i.l.bf16 %v937_v42 }
  0xdb   : > { %797 = vmatpush1.bf16.msra.mxu0 %v796_v43  ;;  %v810_v49 = vpack.c.bf16 %v348_v44, %v332_v40 }
  0xdc   : > { %v357_v50 = vsel %vm355_vm4, %v938_v48, %v939_v47  ;;  %v373_v51 = vsel %vm371_vm5, %v943_v46, %v944_v45 }
  0xdd   : > { %811 = vmatprep.subr.bf16.mxu1 %v810_v49  ;;  %v952_v52 = vpop.permute.xlu1 %951  ;;  %v947_v53 = vpop.permute.xlu0 %946  ;;  %v798_v54 = vpack.c.bf16 %v373_v51, %v357_v50 }
  0xde   : > { %813 = vmatpush3.bf16.msra.mxu1 %v810_v49  ;;  %v954_v55 = vunpack.i.h.bf16 %v952_v52  ;;  %v953_v56 = vunpack.i.l.bf16 %v952_v52  ;;  %v949_v57 = vunpack.i.h.bf16 %v947_v53  ;;  %v948_v58 = vunpack.i.l.bf16 %v947_v53 }
  0xdf   : > { %799 = vmatprep.subr.bf16.mxu0 %v798_v54 }
  0xe0   : > { %v356_v59 = vsel %vm355_vm4, %v948_v58, %v938_v48  ;;  %v372_v60 = vsel %vm371_vm5, %v953_v56, %v943_v46  ;;  %v364_v61 = vsel %vm355_vm4, %v939_v47, %v949_v57  ;;  %v380_v62 = vsel %vm371_vm5, %v944_v45, %v954_v55 }
  0xe1   : > { %v962_v63 = vpop.permute.xlu1 %961  ;;  %v957_v0 = vpop.permute.xlu0 %956  ;;  %v800_v1 = vpack.c.bf16 %v372_v60, %v356_v59  ;;  %v814_v2 = vpack.c.bf16 %v380_v62, %v364_v61 }
  0xe2   : > { %v964_v3 = vunpack.i.h.bf16 %v962_v63  ;;  %v963_v4 = vunpack.i.l.bf16 %v962_v63  ;;  %v959_v5 = vunpack.i.h.bf16 %v957_v0  ;;  %v958_v8 = vunpack.i.l.bf16 %v957_v0 }
  0xe3   : > { %801 = vmatpush1.bf16.msra.mxu0 %v800_v1  ;;  %815 = vmatprep.subr.bf16.mxu1 %v814_v2 }
  0xe4   : > { %817 = vmatpush3.bf16.msra.mxu1 %v814_v2  ;;  %v389_v9 = vsel %vm387_vm6, %v958_v8, %v959_v5  ;;  %v405_v10 = vsel %vm403_vm7, %v963_v4, %v964_v3 }
  0xe5   : > { %v972_v11 = vpop.permute.xlu1 %971  ;;  %v967_v12 = vpop.permute.xlu0 %966  ;;  %v802_v13 = vpack.c.bf16 %v405_v10, %v389_v9 }
  0xe6   : > { %v974_v14 = vunpack.i.h.bf16 %v972_v11  ;;  %v973_v15 = vunpack.i.l.bf16 %v972_v11  ;;  %v969_v16 = vunpack.i.h.bf16 %v967_v12  ;;  %v968_v17 = vunpack.i.l.bf16 %v967_v12 }
  0xe7   : > { %803 = vmatprep.subr.bf16.mxu0 %v802_v13 }
  0xe8   : > { %v388_v18 = vsel %vm387_vm6, %v968_v17, %v958_v8  ;;  %v404_v19 = vsel %vm403_vm7, %v973_v15, %v963_v4  ;;  %v396_v20 = vsel %vm387_vm6, %v959_v5, %v969_v16  ;;  %v412_v21 = vsel %vm403_vm7, %v964_v3, %v974_v14 }
  0xe9   : > { %v418_v22 = vpop.permute.xlu1 %417  ;;  %v416_v23 = vpop.permute.xlu0 %415  ;;  %v804_v24 = vpack.c.bf16 %v404_v19, %v388_v18  ;;  %v818_v25 = vpack.c.bf16 %v412_v21, %v396_v20 }
  0xea   : > { %v421_v26 = vsel %vm419_vm8, %v416_v23, %v418_v22 }
  0xeb   : > { %805 = vmatpush1.bf16.msra.mxu0 %v804_v24  ;;  %819 = vmatprep.subr.bf16.mxu1 %v818_v25 }
  0xec   : > { %466 = vmatprep.subr.mxu0 %v421_v26  ;;  %821 = vmatpush3.bf16.msra.mxu1 %v818_v25 }
  0xed   : > { %v426_v27 = vpop.permute.xlu1 %425  ;;  %v414_v28 = vpop.permute.xlu0 %413 }
  0xee   : > { %v420_v29 = vsel %vm419_vm8, %v414_v28, %v416_v23  ;;  %v428_v30 = vsel %vm419_vm8, %v418_v22, %v426_v27 }
  0xef   : > { %467 = vmatpush1.msra.mxu0 %v420_v29  ;;  %785 = vmatprep.subr.mxu1 %v428_v30 }
  0xf0   : > { %749 = vmatmul.mubr.msk.f32.vlgmr.msra.gmra.mrb[0].mxu0 %vm443_vm0, %v1337_v6  ;;  %786 = vmatpush3.msra.mxu1 %v428_v30 }
  0xf1   : > { %520 = vmatprep.mubr.f32.mxu0 %v1135_v7  ;;  %788 = vmatmul.mubr.msk.f32.vlgmr.msra.gmra.mrb[0].mxu1 %vm443_vm0, %v430_v31 }
  0xf4   : > { %750 = vmatmul.mubr.msk.f32.gmra.mrb[2].mxu0 %vm443_vm0, %v430_v31 }
  0xfe   : > { %v436_v32 = vpop.permute.xlu0 %435  ;;  %v441_v33 = vpop.permute.xlu1 %440 }
 0x1c3   : > { %v516_v34 = vpop.f32.mrb[0].mxu0 }
 0x1c4   : > { %v517_v35 = vadd.f32 %v516_v34, %v436_v32  ;;  %v518_v36 = vpop.f32.mrb[1].mxu0  ;;  %v789_v37 = vpop.f32.mrb[0].mxu1 }
 0x1c5   : > { %v519_v38 = vadd.f32 %v518_v36, %v436_v32  ;;  %v599_v39 = vadd.f32 %v789_v37, %v441_v33  ;;  %v593_v6 = vpop.f32.mrb[1].mxu1 }
 0x1c6   : > { %602 = vst [vmem:[%s284_s24] sm:$0xff] %v517_v35  ;;  %v594_v7 = vadd.f32 %v593_v6, %v436_v32 }
 0x1c7   : > { %603 = vst [vmem:[%s284_s24 + $0x8] sm:$0xff] %v519_v38  ;;  %607 = vst [vmem:[%s284_s24 + $0x28] sm:$0xff] %v599_v39  ;;  %v522_v40 = vpop.f32.mrb[2].mxu0 }
 0x1c8   : > { %v523_v41 = vadd.f32 %v522_v40, %v441_v33  ;;  %604 = vst [vmem:[%s284_s24 + $0x10] sm:$0xff] %v594_v7  ;;  %v524_v42 = vpop.f32.mrb[3].mxu0 }
 0x1c9   : > { %v525_v43 = vadd.f32 %v524_v42, %v441_v33 }
 0x1ca   : > { %605 = vst [vmem:[%s284_s24 + $0x18] sm:$0xff] %v523_v41 }
 0x1cb   : > { %606 = vst [vmem:[%s284_s24 + $0x20] sm:$0xff] %v525_v43 }
 0x1cc   : > { %1051 = shalt.err (!%p1048_p9)
}
 0x1cd   : > { %s1052_s8 = scalar_lea.hbm %s1391_s26, 768  ;;  %s1056_s12 = scalar_lea.hbm %s1444_s4, 1536 }
 0x1ce   : > { %p1053_p1 = scmp.ne.s32.totalorder %s1391_s26, %s1052_s8  ;;  %p1057_p4 = scmp.lt.u32.totalorder %s1391_s26, %s1444_s4 }
 0x1cf   : > { %p1058_p13 = scmp.lt.u32.totalorder %s1056_s12, %s1052_s8  ;;  %p1060_p8 = scmp.lt.u32.totalorder %s1052_s8, %s1391_s26 }
 0x1d0   : > { %p1054_p5 = pnand %p1053_p1, %p1456_p0 }
 0x1d1   : > { %p1059_p3 = por %p1058_p13, %p1057_p4 }
 0x1d2   : > { %p1055_p2 = pneg %p1054_p5 }
 0x1d3   : > { %p1061_p11 = por %p1060_p8, %p1059_p3 }
 0x1d5   : > { %p1062_p6 = pnand %p1061_p11, %p1055_p2 }
 0x1d7   : > { %1065 = shalt.err (!%p1062_p6)
}
 0x1d8   : > { %s1139_s25 = smov 384   ;;  %s1140_s5 = smov 24  }
 0x1d9   : > { %830 = dma.vmem_to_hbm [thread:$0]  (%p1456_p0), %s1386_s27, 768, %s1391_s26, %s609_s18, %s1139_s25, %s1139_s25, %s1140_s5  }
 0x1da PF: > { %s639_s21 = sand.u32 1, %s1104_s15   ;;  %p1457_p7 = scmp.ne.s32.totalorder %s1450_s30, 0 }
 0x1db   : > { %p1458_p10 = scmp.ge.s32.totalorder %s1124_s20, 2  ;;  %s640_s10 = scalar_lea.sflag [#allocation4], %s639_s21 }
 0x1dd   : > { %p840_p12 = pnand %p1458_p10, %p1457_p7 }
 0x1df   : > { %1099 = dma.done.wait (!%p840_p12), %s640_s10, 768  }
 0x1e0   : > { %1101 = vsyncadd (!%p840_p12), %s640_s10, 4294966528  ;;  %s23_s20 = sadd.s32 1, %s1124_s20   ;;  %s1459_s15 = smov %s1108_s16 }
 0x1e1   : > { %p20_p9 = scmp.ge.s32.totalorder %s23_s20, 4   ;;  %s1460_s16 = smov %s1112_s17 }
 0x1e2   : > { %s1461_s17 = smov %s1222_s29  ;;  %s1462_s18 = smov %s1120_s19 }
 0x1e3   : > { %s1463_s19 = smov %s1465_s23  ;;  %22 = sbr.rel (!%p20_p9) target bundleno = 8 (0x8), region = 94 }
 0x1ea   :  { %645 = vsyncpa [#allocation3], 1 }
 0x1eb   :  { %647 = vsyncpa [#allocation3 + $0x1], 1 }
 0x1ec   :  { %648 = vsyncpa [#allocation6], 1 }
 0x1ed   :  { %650 = vsyncpa [#allocation6 + $0x1], 1 }
 0x1ee   :  { %651 = vsyncpa [#allocation4], 1 }
 0x1ef   :  { %653 = vsyncpa [#allocation4 + $0x1], 1 }

</bundles_post_ra>
